<compile_context>
chip_gen: v6e
topology: v6e:2x2x1
jax: 0.10.0
libtpu: 0.0.40
codegen_flags: <defaults>
</compile_context>

<pallas_src>
import math

import jax
import jax.numpy as jnp
from jax.experimental import pallas as pl
from jax.experimental.pallas import tpu as pltpu

HIDDEN = 16
ACTION_RANGE = 1.0
_LOG_2PI = math.log(2.0 * math.pi)


def actor_kernel(state_ref, w1_ref, b1_ref, w2_ref, b2_ref,
                 wh_ref, bh_ref, eps_ref, out_ref):
    A = eps_ref.shape[1]

    x = state_ref[...]

    # fc1 + relu
    a = jnp.dot(x, w1_ref[...], preferred_element_type=jnp.float32) + b1_ref[...]
    a = jnp.maximum(a, 0.0)
    # fc2 + relu
    a = jnp.dot(a, w2_ref[...], preferred_element_type=jnp.float32) + b2_ref[...]
    a = jnp.maximum(a, 0.0)

    # fused mu/sigma heads: one MXU pass instead of two
    heads = jnp.dot(a, wh_ref[...], preferred_element_type=jnp.float32) + bh_ref[...]
    mu = heads[:, :A]
    sig_pre = heads[:, A:]
    sigma = jnp.logaddexp(sig_pre, 0.0)          # softplus, numerically stable
    log_sigma = jnp.log(sigma)                   # computed once, reused below

    eps = eps_ref[...]
    act = mu + sigma * eps                       # reparameterized Normal sample

    # entropy: 0.5 + 0.5*log(2*pi) + log(sigma), summed over action dim
    entropy = jnp.sum(0.5 + 0.5 * _LOG_2PI + log_sigma, axis=1, keepdims=True)

    # Normal log_prob; (act - mu)^2 / (2 sigma^2) == 0.5 * eps^2 exactly
    logp = -0.5 * eps * eps - log_sigma - 0.5 * _LOG_2PI

    # tanh squash + change-of-variables correction (matches PyTorch reference)
    act_tanh = jnp.tanh(act)
    logp = logp - jnp.log(ACTION_RANGE * (1.0 - act_tanh * act_tanh) + 1e-6)
    logp_sum = jnp.sum(logp, axis=1, keepdims=True)

    # single lane-contiguous output: [ act (A) | logp (1) | entropy (1) ]
    out_ref[...] = jnp.concatenate(
        [act_tanh * ACTION_RANGE, logp_sum, entropy], axis=1)


def _pick_batch_tile(B):
    # Favor MXU-filling tiles (256+ on v6e/v7x, 128 on v5e) when B allows it.
    for tb in (512, 256, 128):
        if B % tb == 0:
            return tb
    return B


def actor_forward(state, params, eps):
    B, S = state.shape
    A = params["wmu"].shape[1]
    TB = _pick_batch_tile(B)

    # one-time head packing (outside the kernel)
    wh = jnp.concatenate([params["wmu"], params["wsig"]], axis=1)   # (HIDDEN, 2A)
    bh = jnp.concatenate([params["bmu"], params["bsig"]], axis=1)   # (1, 2A)

    resident = lambda arr: pl.BlockSpec(arr.shape, lambda i: (0, 0))  # VMEM-resident
    batched = lambda ncols: pl.BlockSpec((TB, ncols), lambda i: (i, 0))

    out = pl.pallas_call(
        actor_kernel,
        grid=(B // TB,),
        out_shape=jax.ShapeDtypeStruct((B, A + 2), jnp.float32),
        in_specs=[
            batched(S),                                   # state
            resident(params["w1"]), resident(params["b1"]),
            resident(params["w2"]), resident(params["b2"]),
            resident(wh), resident(bh),
            batched(A),                                   # eps
        ],
        out_specs=batched(A + 2),
        compiler_params=pltpu.CompilerParams(
            dimension_semantics=("parallel",)),           # 2x on v7x, no-op v5e/v6e
    )(state, params["w1"], params["b1"], params["w2"], params["b2"],
      wh, bh, eps)

    act = out[:, :A]
    log_prob = out[:, A:A + 1]
    entropy = out[:, A + 1:A + 2]
    return act, log_prob, entropy


def init_params(key, state_dim, action_dim):
    """Deterministic synthetic init (uniform ~ PyTorch Linear default scale)."""
    def linear(k, fan_in, fan_out):
        kw, kb = jax.random.split(k)
        bound = 1.0 / math.sqrt(fan_in)
        w = jax.random.uniform(kw, (fan_in, fan_out), jnp.float32, -bound, bound)
        b = jax.random.uniform(kb, (1, fan_out), jnp.float32, -bound, bound)
        return w, b

    k1, k2, k3, k4, k5 = jax.random.split(key, 5)
    w1, b1 = linear(k1, state_dim, HIDDEN)
    w2, b2 = linear(k2, HIDDEN, HIDDEN)
    # fc3 exists in __init__ but is unused in forward; skipped.
    wmu, bmu = linear(k4, HIDDEN, action_dim)
    wsig, bsig = linear(k5, HIDDEN, action_dim)
    return {"w1": w1, "b1": b1, "w2": w2, "b2": b2,
            "wmu": wmu, "bmu": bmu, "wsig": wsig, "bsig": bsig}


if __name__ == "__main__":
    B, STATE_DIM, ACTION_DIM = 8, 32, 4

    key = jax.random.PRNGKey(0)
    k_params, k_state, k_eps = jax.random.split(key, 3)

    params = init_params(k_params, STATE_DIM, ACTION_DIM)
    state = jax.random.normal(k_state, (B, STATE_DIM), jnp.float32)
    eps = jax.random.normal(k_eps, (B, ACTION_DIM), jnp.float32)

    act, log_prob, entropy = actor_forward(state, params, eps)
    jax.block_until_ready((act, log_prob, entropy))

    # Pure-JAX reference check of the same math (original formulation).
    a = jnp.maximum(state @ params["w1"] + params["b1"], 0.0)
    a = jnp.maximum(a @ params["w2"] + params["b2"], 0.0)
    mu = a @ params["wmu"] + params["bmu"]
    sigma = jax.nn.softplus(a @ params["wsig"] + params["bsig"])
    smp = mu + sigma * eps
    ent_ref = jnp.sum(0.5 + 0.5 * _LOG_2PI + jnp.log(sigma), axis=1, keepdims=True)
    lp = -((smp - mu) ** 2) / (2 * sigma**2) - jnp.log(sigma) - 0.5 * _LOG_2PI
    th = jnp.tanh(smp)
    lp = jnp.sum(lp - jnp.log(ACTION_RANGE * (1 - th**2) + 1e-6), axis=1, keepdims=True)

    assert jnp.allclose(act, th * ACTION_RANGE, atol=1e-5)
    assert jnp.allclose(log_prob, lp, atol=1e-4)
    assert jnp.allclose(entropy, ent_ref, atol=1e-5)

    print("KERNEL_OK")
</pallas_src>

<mosaic_0001>
module attributes {stable_mosaic.version = 11 : i64} {
  func.func @actor_kernel(%arg0: i32, %arg1: memref<8x32xf32, #tpu.memory_space<vmem>>, %arg2: memref<32x16xf32, #tpu.memory_space<vmem>>, %arg3: memref<1x16xf32, #tpu.memory_space<vmem>>, %arg4: memref<16x16xf32, #tpu.memory_space<vmem>>, %arg5: memref<1x16xf32, #tpu.memory_space<vmem>>, %arg6: memref<16x8xf32, #tpu.memory_space<vmem>>, %arg7: memref<1x8xf32, #tpu.memory_space<vmem>>, %arg8: memref<8x4xf32, #tpu.memory_space<vmem>>, %arg9: memref<8x6xf32, #tpu.memory_space<vmem>>) attributes {dimension_semantics = [#tpu.dimension_semantics<parallel>], iteration_bounds = array<i64: 1>, scalar_prefetch = 0 : i64, scratch_operands = 0 : i64, tpu.core_type = #tpu.core_type<tc>, window_params = [{transform_indices = @transform_0, window_bounds = array<i64: 8, 32>}, {pipeline_mode = #tpu.pipeline_mode<synchronous>, transform_indices = @transform_1, window_bounds = array<i64: 32, 16>}, {pipeline_mode = #tpu.pipeline_mode<synchronous>, transform_indices = @transform_2, window_bounds = array<i64: 1, 16>}, {pipeline_mode = #tpu.pipeline_mode<synchronous>, transform_indices = @transform_3, window_bounds = array<i64: 16, 16>}, {pipeline_mode = #tpu.pipeline_mode<synchronous>, transform_indices = @transform_4, window_bounds = array<i64: 1, 16>}, {pipeline_mode = #tpu.pipeline_mode<synchronous>, transform_indices = @transform_5, window_bounds = array<i64: 16, 8>}, {pipeline_mode = #tpu.pipeline_mode<synchronous>, transform_indices = @transform_6, window_bounds = array<i64: 1, 8>}, {transform_indices = @transform_7, window_bounds = array<i64: 8, 4>}, {transform_indices = @transform_8, window_bounds = array<i64: 8, 6>}]} {
    %c0 = arith.constant 0 : index
    %c0_0 = arith.constant 0 : index
    %0 = vector.load %arg1[%c0, %c0_0] : memref<8x32xf32, #tpu.memory_space<vmem>>, vector<8x32xf32>
    %c0_1 = arith.constant 0 : index
    %c0_2 = arith.constant 0 : index
    %1 = vector.load %arg2[%c0_1, %c0_2] : memref<32x16xf32, #tpu.memory_space<vmem>>, vector<32x16xf32>
    %cst = arith.constant dense<0.000000e+00> : vector<8x16xf32>
    %2 = tpu.matmul %0, %1, %cst {dimension_numbers = #tpu.dot_dimension_numbers<[1], [0], [0], [1], [0, 0, 1, 1], [], []>} : vector<8x32xf32>, vector<32x16xf32>, vector<8x16xf32> -> vector<8x16xf32>
    %c0_3 = arith.constant 0 : index
    %c0_4 = arith.constant 0 : index
    %3 = vector.load %arg3[%c0_3, %c0_4] : memref<1x16xf32, #tpu.memory_space<vmem>>, vector<1x16xf32>
    %4 = vector.broadcast %3 : vector<1x16xf32> to vector<8x16xf32>
    %5 = arith.addf %2, %4 : vector<8x16xf32>
    %cst_5 = arith.constant 0.000000e+00 : f32
    %6 = vector.broadcast %cst_5 : f32 to vector<8x16xf32>
    %7 = arith.maximumf %5, %6 : vector<8x16xf32>
    %c0_6 = arith.constant 0 : index
    %c0_7 = arith.constant 0 : index
    %8 = vector.load %arg4[%c0_6, %c0_7] : memref<16x16xf32, #tpu.memory_space<vmem>>, vector<16x16xf32>
    %cst_8 = arith.constant dense<0.000000e+00> : vector<8x16xf32>
    %9 = tpu.matmul %7, %8, %cst_8 {dimension_numbers = #tpu.dot_dimension_numbers<[1], [0], [0], [1], [0, 0, 1, 1], [], []>} : vector<8x16xf32>, vector<16x16xf32>, vector<8x16xf32> -> vector<8x16xf32>
    %c0_9 = arith.constant 0 : index
    %c0_10 = arith.constant 0 : index
    %10 = vector.load %arg5[%c0_9, %c0_10] : memref<1x16xf32, #tpu.memory_space<vmem>>, vector<1x16xf32>
    %11 = vector.broadcast %10 : vector<1x16xf32> to vector<8x16xf32>
    %12 = arith.addf %9, %11 : vector<8x16xf32>
    %cst_11 = arith.constant 0.000000e+00 : f32
    %13 = vector.broadcast %cst_11 : f32 to vector<8x16xf32>
    %14 = arith.maximumf %12, %13 : vector<8x16xf32>
    %c0_12 = arith.constant 0 : index
    %c0_13 = arith.constant 0 : index
    %15 = vector.load %arg6[%c0_12, %c0_13] : memref<16x8xf32, #tpu.memory_space<vmem>>, vector<16x8xf32>
    %cst_14 = arith.constant dense<0.000000e+00> : vector<8x8xf32>
    %16 = tpu.matmul %14, %15, %cst_14 {dimension_numbers = #tpu.dot_dimension_numbers<[1], [0], [0], [1], [0, 0, 1, 1], [], []>} : vector<8x16xf32>, vector<16x8xf32>, vector<8x8xf32> -> vector<8x8xf32>
    %c0_15 = arith.constant 0 : index
    %c0_16 = arith.constant 0 : index
    %17 = vector.load %arg7[%c0_15, %c0_16] : memref<1x8xf32, #tpu.memory_space<vmem>>, vector<1x8xf32>
    %18 = vector.broadcast %17 : vector<1x8xf32> to vector<8x8xf32>
    %19 = arith.addf %16, %18 : vector<8x8xf32>
    %20 = vector.extract_strided_slice %19 {offsets = [0, 0], sizes = [8, 4], strides = [1, 1]} : vector<8x8xf32> to vector<8x4xf32>
    %21 = vector.extract_strided_slice %19 {offsets = [0, 4], sizes = [8, 4], strides = [1, 1]} : vector<8x8xf32> to vector<8x4xf32>
    %cst_17 = arith.constant 0.000000e+00 : f32
    %22 = vector.broadcast %cst_17 : f32 to vector<8x4xf32>
    %23 = arith.maximumf %21, %22 : vector<8x4xf32>
    %24 = vector.broadcast %cst_17 : f32 to vector<8x4xf32>
    %25 = arith.subf %21, %24 : vector<8x4xf32>
    %26 = arith.cmpf one, %25, %25 : vector<8x4xf32>
    %27 = vector.broadcast %cst_17 : f32 to vector<8x4xf32>
    %28 = arith.addf %21, %27 : vector<8x4xf32>
    %29 = math.absf %25 : vector<8x4xf32>
    %cst_18 = arith.constant 0.000000e+00 : f32
    %30 = vector.broadcast %cst_18 : f32 to vector<8x4xf32>
    %31 = arith.subf %30, %29 : vector<8x4xf32>
    %32 = math.exp %31 : vector<8x4xf32>
    %33 = math.log1p %32 : vector<8x4xf32>
    %34 = arith.addf %23, %33 : vector<8x4xf32>
    %35 = arith.select %26, %28, %34 : vector<8x4xi1>, vector<8x4xf32>
    %36 = math.log %35 : vector<8x4xf32>
    %c0_19 = arith.constant 0 : index
    %c0_20 = arith.constant 0 : index
    %37 = vector.load %arg8[%c0_19, %c0_20] : memref<8x4xf32, #tpu.memory_space<vmem>>, vector<8x4xf32>
    %38 = arith.mulf %35, %37 : vector<8x4xf32>
    %39 = arith.addf %20, %38 : vector<8x4xf32>
    %cst_21 = arith.constant 1.41893852 : f32
    %40 = vector.broadcast %cst_21 : f32 to vector<8x4xf32>
    %41 = arith.addf %40, %36 : vector<8x4xf32>
    %cst_22 = arith.constant dense<0.000000e+00> : vector<8xf32>
    %42 = vector.multi_reduction <add>, %41, %cst_22 [1] : vector<8x4xf32> to vector<8xf32>
    %43 = vector.shape_cast %42 : vector<8xf32> to vector<8x1xf32>
    %cst_23 = arith.constant -5.000000e-01 : f32
    %44 = vector.broadcast %cst_23 : f32 to vector<8x4xf32>
    %45 = arith.mulf %44, %37 : vector<8x4xf32>
    %46 = arith.mulf %45, %37 : vector<8x4xf32>
    %47 = arith.subf %46, %36 : vector<8x4xf32>
    %cst_24 = arith.constant 0.918938517 : f32
    %48 = vector.broadcast %cst_24 : f32 to vector<8x4xf32>
    %49 = arith.subf %47, %48 : vector<8x4xf32>
    %50 = math.tanh %39 : vector<8x4xf32>
    %51 = arith.mulf %50, %50 : vector<8x4xf32>
    %cst_25 = arith.constant 1.000000e+00 : f32
    %52 = vector.broadcast %cst_25 : f32 to vector<8x4xf32>
    %53 = arith.subf %52, %51 : vector<8x4xf32>
    %cst_26 = arith.constant 1.000000e+00 : f32
    %54 = vector.broadcast %cst_26 : f32 to vector<8x4xf32>
    %55 = arith.mulf %54, %53 : vector<8x4xf32>
    %cst_27 = arith.constant 9.99999997E-7 : f32
    %56 = vector.broadcast %cst_27 : f32 to vector<8x4xf32>
    %57 = arith.addf %55, %56 : vector<8x4xf32>
    %58 = math.log %57 : vector<8x4xf32>
    %59 = arith.subf %49, %58 : vector<8x4xf32>
    %cst_28 = arith.constant dense<0.000000e+00> : vector<8xf32>
    %60 = vector.multi_reduction <add>, %59, %cst_28 [1] : vector<8x4xf32> to vector<8xf32>
    %61 = vector.shape_cast %60 : vector<8xf32> to vector<8x1xf32>
    %cst_29 = arith.constant 1.000000e+00 : f32
    %62 = vector.broadcast %cst_29 : f32 to vector<8x4xf32>
    %63 = arith.mulf %50, %62 : vector<8x4xf32>
    %64 = tpu.concatenate %63, %61, %43 in 1 : vector<8x4xf32>, vector<8x1xf32>, vector<8x1xf32> -> vector<8x6xf32>
    %c0_30 = arith.constant 0 : index
    %c0_31 = arith.constant 0 : index
    %65 = vector.load %arg9[%c0_30, %c0_31] : memref<8x6xf32, #tpu.memory_space<vmem>>, vector<8x6xf32>
    tpu.vector_store %arg9[%c0_30, %c0_31], %64 {strides = array<i32>} : memref<8x6xf32, #tpu.memory_space<vmem>>, vector<8x6xf32>,
    return
  }
  func.func @transform_0(%arg0: i32) -> (i32, i32) {
    %c0_i32 = arith.constant 0 : i32
    %c0_i32_0 = arith.constant 0 : i32
    return %arg0, %c0_i32 : i32, i32
  }
  func.func @transform_1(%arg0: i32) -> (i32, i32) {
    %c0_i32 = arith.constant 0 : i32
    %c0_i32_0 = arith.constant 0 : i32
    %c0_i32_1 = arith.constant 0 : i32
    return %c0_i32, %c0_i32_0 : i32, i32
  }
  func.func @transform_2(%arg0: i32) -> (i32, i32) {
    %c0_i32 = arith.constant 0 : i32
    %c0_i32_0 = arith.constant 0 : i32
    %c0_i32_1 = arith.constant 0 : i32
    return %c0_i32, %c0_i32_0 : i32, i32
  }
  func.func @transform_3(%arg0: i32) -> (i32, i32) {
    %c0_i32 = arith.constant 0 : i32
    %c0_i32_0 = arith.constant 0 : i32
    %c0_i32_1 = arith.constant 0 : i32
    return %c0_i32, %c0_i32_0 : i32, i32
  }
  func.func @transform_4(%arg0: i32) -> (i32, i32) {
    %c0_i32 = arith.constant 0 : i32
    %c0_i32_0 = arith.constant 0 : i32
    %c0_i32_1 = arith.constant 0 : i32
    return %c0_i32, %c0_i32_0 : i32, i32
  }
  func.func @transform_5(%arg0: i32) -> (i32, i32) {
    %c0_i32 = arith.constant 0 : i32
    %c0_i32_0 = arith.constant 0 : i32
    %c0_i32_1 = arith.constant 0 : i32
    return %c0_i32, %c0_i32_0 : i32, i32
  }
  func.func @transform_6(%arg0: i32) -> (i32, i32) {
    %c0_i32 = arith.constant 0 : i32
    %c0_i32_0 = arith.constant 0 : i32
    %c0_i32_1 = arith.constant 0 : i32
    return %c0_i32, %c0_i32_0 : i32, i32
  }
  func.func @transform_7(%arg0: i32) -> (i32, i32) {
    %c0_i32 = arith.constant 0 : i32
    %c0_i32_0 = arith.constant 0 : i32
    return %arg0, %c0_i32 : i32, i32
  }
  func.func @transform_8(%arg0: i32) -> (i32, i32) {
    %c0_i32 = arith.constant 0 : i32
    %c0_i32_0 = arith.constant 0 : i32
    return %arg0, %c0_i32 : i32, i32
  }
}

</mosaic_0001>

<bundles_post_ra>
// kernel: tpu_custom_call.1
= control target key start
LH: loop header
LB: loop body
LE: loop exit
PB: predicated region body
PF: predicated region fallthrough
CT: control target
= control target key end

     0   :  { %v440_v1 = vmov 0.0   ;;  %vm441_vm0 = vmmov 0   ;;  %s540_s0 = inlined_call_operand.vmem [shape: f32[8,32], index: 0, kind: input, shape index: {}]   ;;  %s541_s1 = inlined_call_operand.vmem [shape: f32[32,16], index: 1, kind: input, shape index: {}]   ;;  %s542_s2 = inlined_call_operand.vmem [shape: f32[1,16], index: 2, kind: input, shape index: {}]   ;;  %s543_s3 = inlined_call_operand.vmem [shape: f32[16,16], index: 3, kind: input, shape index: {}]   ;;  %s544_s4 = inlined_call_operand.vmem [shape: f32[1,16], index: 4, kind: input, shape index: {}]   ;;  %s545_s5 = inlined_call_operand.vmem [shape: f32[16,8], index: 5, kind: input, shape index: {}]   ;;  %s546_s6 = inlined_call_operand.vmem [shape: f32[1,8], index: 6, kind: input, shape index: {}]   ;;  %s547_s7 = inlined_call_operand.vmem [shape: f32[8,4], index: 7, kind: input, shape index: {}]   ;;  %s548_s8 = inlined_call_operand.hbm [shape: f32[8,6], index: 8, kind: output, shape index: {}]  }
   0x1   :  { %v34_v0 = vld [vmem:[%s541_s1 + $0x18] sm:$0xff]  ;;  %378 = vmatprep.subr.mxu0 %v440_v1  ;;  %v33_v2 = vld [vmem:[%s541_s1 + $0x10] sm:$0xff]  ;;  %386 = vmatprep.mubr.msk.f32.mxu0 %vm441_vm0, %v440_v1 }
   0x2   :  { %379 = vmatpush3.msra.mxu0 %v34_v0  ;;  %389 = vmatprep.subr.mxu1 %v440_v1 }
   0x3   :  { %13 = vsyncpa [#allocation3], 0  ;;  %380 = vmatprep.subr.mxu0 %v440_v1  ;;  %v32_v3 = vld [vmem:[%s541_s1 + $0x8] sm:$0xff]  ;;  %393 = vmatprep.mubr.msk.f32.mxu1 %vm441_vm0, %v440_v1  ;;  %v31_v4 = vld [vmem:[%s541_s1] sm:$0xff]  ;;  %vm42_vm1 = vcmask 261120   ;;  %vm126_vm2 = vcmask 130048  }
   0x4   :  { %381 = vmatpush3.msra.mxu0 %v33_v2  ;;  %v30_v5 = vld [vmem:[%s540_s0] sm:$0xff]  ;;  %v118_v6 = vld [vmem:[%s543_s3 + $0x8] sm:$0xff]  ;;  %s442_s23 = smov 4   ;;  %vm319_vm5 = vcmask 31744   ;;  %vm342_vm6 = vcmask 39936   ;;  %vm344_vm7 = vcmask 48128  }
   0x5   :  { %382 = vmatprep.subr.mxu0 %v440_v1  ;;  %390 = vmatpush3.msra.mxu1 %v118_v6  ;;  %v117_v7 = vld [vmem:[%s543_s3] sm:$0xff]  ;;  %v202_v13 = vld [vmem:[%s545_s5 + $0x8] sm:$0xff] }
   0x6   :  { %383 = vmatpush3.msra.mxu0 %v32_v3  ;;  %391 = vmatprep.subr.mxu1 %v440_v1  ;;  %v360_v8 = vld [vmem:[%s542_s2] ss:$0 sm:$0xff] }
   0x7   :  { %384 = vmatprep.subr.mxu0 %v440_v1  ;;  %392 = vmatpush3.msra.mxu1 %v117_v7  ;;  %v201_v14 = vld [vmem:[%s545_s5] sm:$0xff]  ;;  %s444_s5 = smov [#allocation2]  }
   0x8   :  { %385 = vmatpush3.msra.mxu0 %v31_v4  ;;  %396 = vmatprep.subr.mxu1 %v440_v1  ;;  %v303_v15 = vld [vmem:[%s547_s7] sm:$0xff] }
   0x9   :  { %387 = vmatmul.mubr.msk.f32.vlgmr.msra.gmra.mxu0 %vm42_vm1, %v30_v5  ;;  %305 = vrot.lane.b32.xlu0 %v303_v15, %s442_s23  ;;  %v362_v16 = vld [vmem:[%s544_s4] ss:$0 sm:$0xff]  ;;  %s443_s4 = smov 124   ;;  %v323_v54 = vmul.f32 -0.5, %v303_v15 }
   0xa   :  { %v364_v21 = vld [vmem:[%s546_s6] ss:$0 sm:$0xff]  ;;  %s352_s6 = sshll.u32 %s444_s5, 4  ;;  %s353_s6 = int_to_ptr.vmem [resolvable:$true] %s352_s6 }
   0xb   :  { %v324_v55 = vmul.f32 %v323_v54, %v303_v15  ;;  %s418_s7 = scalar_lea.vmem %s353_s6, 128  ;;  %p423_p1 = scmp.lt.s32.totalorder %s353_s6, %s353_s6 }
   0xc   :  { %p419_p0 = scmp.ne.s32.totalorder %s353_s6, %s418_s7  ;;  %p424_p2 = scmp.lt.s32.totalorder %s418_s7, %s418_s7 }
   0xe   :  { %p425_p3 = por %p424_p2, %p423_p1 }
  0x10   :  { %p426_p4 = pnand %p425_p3, %p419_p0 }
  0x7b   :  { %v306_v38 = vpop.permute.xlu0 %305 }
  0xc9   :  { %v112_v9 = vpop.f32.mrf.mxu0 }
  0xca   :  { %v113_v10 = vadd.f32 %v360_v8, %v112_v9 }
  0xcb   :  { %v388_v11 = vpop.f32.mrf.mxu0 }
  0xcc   :  { %v116_v12 = vmax.f32 %v113_v10, 0.0 }
  0xce   :  { %394 = vmatmul.mubr.msk.f32.vlgmr.msra.gmra.mxu1 %vm126_vm2, %v116_v12 }
  0xcf   :  { %400 = vmatprep.mubr.msk.f32.mxu1 %vm441_vm0, %v440_v1  ;;  %397 = vmatpush3.msra.mxu1 %v202_v13 }
  0xd0   :  { %398 = vmatprep.subr.mxu1 %v440_v1 }
  0xd1   :  { %399 = vmatpush3.msra.mxu1 %v201_v14 }
 0x18e   :  { %v196_v17 = vpop.f32.mrf.mxu1 }
 0x18f   :  { %v197_v18 = vadd.f32 %v362_v16, %v196_v17 }
 0x190   :  { %v395_v19 = vpop.f32.mrf.mxu1 }
 0x191   :  { %v200_v20 = vmax.f32 %v197_v18, 0.0 }
 0x193   :  { %401 = vmatmul.mubr.msk.f32.vlgmr.msra.gmra.mxu1 %vm126_vm2, %v200_v20 }
 0x253   :  { %v279_v22 = vpop.f32.mrf.mxu1 }
 0x254   :  { %v280_v23 = vadd.f32 %v364_v21, %v279_v22 }
 0x255   :  { %v402_v24 = vpop.f32.mrf.mxu1 }
 0x256   :  { %v286_v25 = vand.u32 2147483647, %v280_v23  ;;  %v283_v36 = vmax.f32 %v280_v23, 0.0  ;;  %vm284_vm4 = vcmp.ne.f32.partialorder %v280_v23, %v280_v23 }
 0x258   :  { %v287_v26 = vsub.f32 0.0, %v286_v25 }
 0x25a   :  { %v288_v27 = vmul.f32 1.442695, %v287_v26 }
 0x25c   :  { %408 = vpow2.f32 %v288_v27 }
 0x269   :  { %v409_v28 = vpop.eup %408 }
 0x26a   :  { %v290_v29 = vadd.f32 1.0, %v409_v28  ;;  %v293_v30 = vmul.f32 -0.5, %v409_v28  ;;  %v296_v32 = vand.u32 2147483647, %v409_v28 }
 0x26c   :  { %410 = vlog2.f32 %v290_v29  ;;  %v294_v31 = vadd.f32 1.0, %v293_v30  ;;  %vm297_vm3 = vcmp.lt.f32.partialorder %v296_v32, 0.0004427343 }
 0x26e   :  { %v295_v35 = vmul.f32 %v409_v28, %v294_v31 }
 0x279   :  { %v411_v33 = vpop.eup %410 }
 0x27a   :  { %v292_v34 = vmul.f32 0.6931472, %v411_v33 }
 0x27c   :  { %v298_v37 = vsel %vm297_vm3, %v295_v35, %v292_v34 }
 0x27d   :  { %v299_v39 = vadd.f32 %v298_v37, %v283_v36 }
 0x27f   :  { %v300_v40 = vsel %vm284_vm4, %v280_v23, %v299_v39 }
 0x280   :  { %412 = vlog2.f32 %v300_v40  ;;  %v308_v41 = vmul.f32 %v306_v38, %v300_v40 }
 0x282   :  { %310 = vrot.lane.b32.xlu0 %v308_v41, %s443_s4 }
 0x28d   :  { %v413_v42 = vpop.eup %412 }
 0x28e   :  { %v302_v43 = vmul.f32 0.6931472, %v413_v42 }
 0x290   :  { %326 = vrot.lane.b32.xlu1 %v302_v43, %s443_s4  ;;  %v314_v44 = vadd.f32 1.4189385, %v302_v43 }
 0x294   :  { %316 = vrot.lane.b32.xlu1 %v314_v44, %s443_s4 }
 0x2f4   :  { %v311_v45 = vpop.permute.xlu0 %310 }
 0x2f5   :  { %v313_v46 = vadd.f32 %v311_v45, %v280_v23 }
 0x2f7   :  { %414 = vtanh.f32 %v313_v46 }
 0x302   :  { %v327_v47 = vpop.permute.xlu1 %326 }
 0x303   :  { %v329_v56 = vsub.f32 %v324_v55, %v327_v47 }
 0x304   :  { %v415_v48 = vpop.eup %414 }
 0x305   :  { %v332_v49 = vmul.f32 %v415_v48, %v415_v48  ;;  %v366_v58 = vadd.f32 -0.9189385, %v329_v56 }
 0x306   :  { %v317_v50 = vpop.permute.xlu1 %316 }
 0x307   :  { %v320_v51 = vsel %vm319_vm5, %v317_v50, 0.0  ;;  %v333_v52 = vsub.f32 1.0, %v332_v49 }
 0x308   :  { %321 = vadd.xlane.f32.xlu1 %v320_v51 }
 0x309   :  { %v334_v53 = vadd.f32 1e-06, %v333_v52 }
 0x30b   :  { %416 = vlog2.f32 %v334_v53 }
 0x318   :  { %v417_v57 = vpop.eup %416 }
 0x319   :  { %v336_v59 = vmul.f32 0.6931472, %v417_v57 }
 0x31b   :  { %v337_v60 = vsub.f32 %v366_v58, %v336_v59 }
 0x31d   :  { %v338_v61 = vsel %vm319_vm5, %v337_v60, 0.0 }
 0x31e   :  { %339 = vadd.xlane.f32.xlu0 %v338_v61 }
 0x391   :  { %v322_v63 = vpop.xlane.xlu1 %321 }
 0x3a7   :  { %v340_v62 = vpop.xlane.xlu0 %339 }
 0x3a8   :  { %v341_v0 = vsel %vm319_vm5, %v415_v48, %v340_v62 }
 0x3a9   :  { %v343_v1 = vsel %vm342_vm6, %v341_v0, %v322_v63 }
 0x3aa   :  { %345 = vst.msk [vmem:[#allocation2] sm:$0xff] %vm344_vm7, %v343_v1 }
 0x3ab   :  { %429 = shalt.err (!%p426_p4)
}
 0x3ac   :  { %355 = dma.vmem_to_hbm [thread:$0]  %s353_s6, 128, %s548_s8, [#allocation3]  }
 0x3ad   :  { %438 = dma.done.wait [#allocation3], 128  }
 0x3ae   :  { %439 = vsyncadd [#allocation3], 4294967168 }
 0x3af   :  { %359 = vsyncpa [#allocation3], 1 }

</bundles_post_ra>
